<compile_context>
chip_gen: v5e
topology: v5e:2x2
jax: 0.10.0
libtpu: 0.0.40
codegen_flags: <defaults>
</compile_context>

<pallas_src>
import functools

import jax
import jax.numpy as jnp
from jax.experimental import pallas as pl
from jax.experimental.pallas import tpu as pltpu

_EPS = 1e-6
# Per-input VMEM tile budget.  2 inputs x 2 pipeline buffers x 2 MiB = 8 MiB,
# leaving headroom for elementwise temporaries under the 32 MiB scoped limit.
_TARGET_TILE_BYTES = 2 * 1024 * 1024
_VMEM_LIMIT_BYTES = 32 * 1024 * 1024


def _index_dice_partial_kernel(y_pred_ref, y_true_ref, inters_ref, rest_ref):
    """Accumulate per-(b, c) partial sums over the N (lane) grid axis."""

    @pl.when(pl.program_id(1) == 0)
    def _init():
        inters_ref[...] = jnp.zeros_like(inters_ref)
        rest_ref[...] = jnp.zeros_like(rest_ref)

    yp = y_pred_ref[...].astype(jnp.float32)   # (tb, CH, tn)
    yt = y_true_ref[...].astype(jnp.float32)   # (tb, CH, tn)

    # Adjacent channel pairs (c, c+1), vectorized over c.
    yp_lo, yp_hi = yp[:, :-1, :], yp[:, 1:, :]
    yt_lo, yt_hi = yt[:, :-1, :], yt[:, 1:, :]

    y1 = jnp.maximum(yp_lo, yt_lo)   # max(pred_c,   true_c)
    y2 = jnp.minimum(yp_hi, yt_hi)   # min(pred_c+1, true_c+1)

    hi = jnp.maximum(y2 - y1, 0.0)            # clamp(., 0)
    hp = jnp.maximum(yp_hi - yp_lo, 0.0)
    hg = jnp.maximum(yt_hi - yt_lo, 0.0)

    # Two lane reductions instead of three (uni = inters + rest).
    inters_ref[...] += jnp.sum(hi, axis=-1)       # (tb, CH-1)
    rest_ref[...] += jnp.sum(hp + hg, axis=-1)    # (tb, CH-1)


def _tile_candidates(dim, align):
    """Divisors of `dim` that are either `dim` itself or multiples of `align`."""
    cands = {dim}
    d = align
    while d < dim:
        if dim % d == 0:
            cands.add(d)
        d += align
    return sorted(cands)


def _choose_tiles(b, ch, n, itemsize):
    """Pick (tb, tn) honoring TPU block-shape rules and the VMEM budget."""
    tb_opts = _tile_candidates(b, 8)      # sublane dim of the (tb, CH-1) outputs
    tn_opts = _tile_candidates(n, 128)    # lane dim of the input tiles
    fitting, everything = [], []
    for tb in tb_opts:
        for tn in tn_opts:
            nbytes = tb * ch * tn * itemsize
            everything.append((nbytes, tn, tb))
            if nbytes <= _TARGET_TILE_BYTES:
                fitting.append((nbytes, tn, tb))
    # Biggest tile under budget (amortizes ~0.35 us per-step overhead);
    # if nothing fits (no usable divisors), fall back to the smallest legal tile.
    _, tn, tb = max(fitting) if fitting else min(everything)
    return tb, tn


@functools.partial(jax.jit, static_argnames=("reduction",))
def index_diceloss(y_pred, y_true, reduction="mean"):
    """Pallas implementation of index_diceloss.forward (returns a scalar)."""
    if reduction not in ("mean", "sum"):
        raise NotImplementedError(reduction)
    b, ch, n = y_true.shape
    assert y_pred.shape == (b, ch, n), (y_pred.shape, y_true.shape)
    assert ch >= 2, "index_diceloss needs at least 2 channels"

    itemsize = max(y_pred.dtype.itemsize, y_true.dtype.itemsize)
    tb, tn = _choose_tiles(b, ch, n, itemsize)
    grid = (b // tb, n // tn)

    inters, rest = pl.pallas_call(
        _index_dice_partial_kernel,
        out_shape=(
            jax.ShapeDtypeStruct((b, ch - 1), jnp.float32),   # sum_n hi
            jax.ShapeDtypeStruct((b, ch - 1), jnp.float32),   # sum_n (hp + hg)
        ),
        grid_spec=pltpu.PrefetchScalarGridSpec(
            num_scalar_prefetch=0,
            grid=grid,
            in_specs=[
                pl.BlockSpec((tb, ch, tn), lambda i, k: (i, 0, k)),
                pl.BlockSpec((tb, ch, tn), lambda i, k: (i, 0, k)),
            ],
            out_specs=(
                pl.BlockSpec((tb, ch - 1), lambda i, k: (i, 0)),
                pl.BlockSpec((tb, ch - 1), lambda i, k: (i, 0)),
            ),
        ),
        compiler_params=pltpu.CompilerParams(
            dimension_semantics=("parallel", "arbitrary"),
            vmem_limit_bytes=_VMEM_LIMIT_BYTES,
        ),
    )(y_pred, y_true)

    # Tiny (B, CH-1) epilogue in plain JAX, matching the PyTorch module.
    uni = rest + inters
    ious = 2.0 * inters / (uni + _EPS)
    red = jnp.mean(ious) if reduction == "mean" else jnp.sum(ious)
    return -jnp.log(red)


def _reference(y_pred, y_true, reduction="mean"):
    """Pure-JAX reference mirroring the PyTorch forward."""
    yp_lo, yp_hi = y_pred[:, :-1, :], y_pred[:, 1:, :]
    yt_lo, yt_hi = y_true[:, :-1, :], y_true[:, 1:, :]
    y1 = jnp.maximum(yp_lo, yt_lo)
    y2 = jnp.minimum(yp_hi, yt_hi)
    hi = jnp.maximum(y2 - y1, 0.0)
    hp = jnp.maximum(yp_hi - yp_lo, 0.0)
    hg = jnp.maximum(yt_hi - yt_lo, 0.0)
    inters = jnp.sum(hi, axis=-1)
    uni = jnp.sum(hp, axis=-1) + jnp.sum(hg, axis=-1) + inters
    ious = 2.0 * inters / (uni + _EPS)
    red = jnp.mean(ious) if reduction == "mean" else jnp.sum(ious)
    return -jnp.log(red)


def _make_inputs(key, b, ch, n, dtype=jnp.float32):
    kp, kt = jax.random.split(key)
    # Cumulative positive values along the channel axis -> monotonically
    # increasing per-channel "indices", the typical use of this loss.
    y_pred = jnp.cumsum(jax.random.uniform(kp, (b, ch, n), dtype=dtype), axis=1)
    y_true = jnp.cumsum(jax.random.uniform(kt, (b, ch, n), dtype=dtype), axis=1)
    return y_pred, y_true


if __name__ == "__main__":
    # Small deterministic example consistent with the module: y shape (b, ch, n).
    y_pred, y_true = _make_inputs(jax.random.PRNGKey(0), b=2, ch=4, n=16)

    loss = jax.block_until_ready(index_diceloss(y_pred, y_true, reduction="mean"))
    ref = _reference(y_pred, y_true, reduction="mean")
    assert jnp.allclose(loss, ref, rtol=1e-4, atol=1e-5), (loss, ref)

    loss_s = jax.block_until_ready(index_diceloss(y_pred, y_true, reduction="sum"))
    ref_s = _reference(y_pred, y_true, reduction="sum")
    assert jnp.allclose(loss_s, ref_s, rtol=1e-4, atol=1e-5), (loss_s, ref_s)

    # Larger deterministic case that exercises the (parallel B, arbitrary N)
    # grid and the cross-N-block accumulation path (multiple tiles per input).
    y_pred_l, y_true_l = _make_inputs(jax.random.PRNGKey(1), b=8, ch=4, n=65536)
    loss_l = jax.block_until_ready(index_diceloss(y_pred_l, y_true_l, reduction="mean"))
    ref_l = _reference(y_pred_l, y_true_l, reduction="mean")
    assert jnp.allclose(loss_l, ref_l, rtol=1e-4, atol=1e-5), (loss_l, ref_l)

    print("KERNEL_OK")
</pallas_src>

<mosaic_0001>
module attributes {stable_mosaic.version = 11 : i64} {
  func.func @_index_dice_partial_kernel(%arg0: i32, %arg1: i32, %arg2: memref<2x4x16xf32, #tpu.memory_space<vmem>>, %arg3: memref<2x4x16xf32, #tpu.memory_space<vmem>>, %arg4: memref<2x3xf32, #tpu.memory_space<vmem>>, %arg5: memref<2x3xf32, #tpu.memory_space<vmem>>) attributes {dimension_semantics = [#tpu.dimension_semantics<parallel>, #tpu.dimension_semantics<arbitrary>], iteration_bounds = array<i64: 1, 1>, scalar_prefetch = 0 : i64, scratch_operands = 0 : i64, tpu.core_type = #tpu.core_type<tc>, window_params = [{transform_indices = @transform_0, window_bounds = array<i64: 2, 4, 16>}, {transform_indices = @transform_1, window_bounds = array<i64: 2, 4, 16>}, {transform_indices = @transform_2, window_bounds = array<i64: 2, 3>}, {transform_indices = @transform_3, window_bounds = array<i64: 2, 3>}]} {
    %c0_i32 = arith.constant 0 : i32
    %0 = arith.cmpi eq, %arg1, %c0_i32 : i32
    %1 = arith.extui %0 : i1 to i32
    %c0_i32_0 = arith.constant 0 : i32
    %2 = arith.cmpi ne, %1, %c0_i32_0 : i32
    scf.if %2 {
      %cst_18 = arith.constant 0.000000e+00 : f32
      %29 = vector.broadcast %cst_18 : f32 to vector<2x3xf32>
      %c0_19 = arith.constant 0 : index
      %c0_20 = arith.constant 0 : index
      %30 = vector.load %arg4[%c0_19, %c0_20] : memref<2x3xf32, #tpu.memory_space<vmem>>, vector<2x3xf32>
      tpu.vector_store %arg4[%c0_19, %c0_20], %29 {strides = array<i32>} : memref<2x3xf32, #tpu.memory_space<vmem>>, vector<2x3xf32>,
      %cst_21 = arith.constant 0.000000e+00 : f32
      %31 = vector.broadcast %cst_21 : f32 to vector<2x3xf32>
      %c0_22 = arith.constant 0 : index
      %c0_23 = arith.constant 0 : index
      %32 = vector.load %arg5[%c0_22, %c0_23] : memref<2x3xf32, #tpu.memory_space<vmem>>, vector<2x3xf32>
      tpu.vector_store %arg5[%c0_22, %c0_23], %31 {strides = array<i32>} : memref<2x3xf32, #tpu.memory_space<vmem>>, vector<2x3xf32>,
    } else {
    }
    %c0 = arith.constant 0 : index
    %c0_1 = arith.constant 0 : index
    %c0_2 = arith.constant 0 : index
    %3 = vector.load %arg2[%c0, %c0_1, %c0_2] : memref<2x4x16xf32, #tpu.memory_space<vmem>>, vector<2x4x16xf32>
    %c0_3 = arith.constant 0 : index
    %c0_4 = arith.constant 0 : index
    %c0_5 = arith.constant 0 : index
    %4 = vector.load %arg3[%c0_3, %c0_4, %c0_5] : memref<2x4x16xf32, #tpu.memory_space<vmem>>, vector<2x4x16xf32>
    %5 = vector.extract_strided_slice %3 {offsets = [0, 0, 0], sizes = [2, 3, 16], strides = [1, 1, 1]} : vector<2x4x16xf32> to vector<2x3x16xf32>
    %6 = vector.extract_strided_slice %3 {offsets = [0, 1, 0], sizes = [2, 3, 16], strides = [1, 1, 1]} : vector<2x4x16xf32> to vector<2x3x16xf32>
    %7 = vector.extract_strided_slice %4 {offsets = [0, 0, 0], sizes = [2, 3, 16], strides = [1, 1, 1]} : vector<2x4x16xf32> to vector<2x3x16xf32>
    %8 = vector.extract_strided_slice %4 {offsets = [0, 1, 0], sizes = [2, 3, 16], strides = [1, 1, 1]} : vector<2x4x16xf32> to vector<2x3x16xf32>
    %9 = arith.maximumf %5, %7 : vector<2x3x16xf32>
    %10 = arith.minimumf %6, %8 : vector<2x3x16xf32>
    %11 = arith.subf %10, %9 : vector<2x3x16xf32>
    %cst = arith.constant 0.000000e+00 : f32
    %12 = vector.broadcast %cst : f32 to vector<2x3x16xf32>
    %13 = arith.maximumf %11, %12 : vector<2x3x16xf32>
    %14 = arith.subf %6, %5 : vector<2x3x16xf32>
    %cst_6 = arith.constant 0.000000e+00 : f32
    %15 = vector.broadcast %cst_6 : f32 to vector<2x3x16xf32>
    %16 = arith.maximumf %14, %15 : vector<2x3x16xf32>
    %17 = arith.subf %8, %7 : vector<2x3x16xf32>
    %cst_7 = arith.constant 0.000000e+00 : f32
    %18 = vector.broadcast %cst_7 : f32 to vector<2x3x16xf32>
    %19 = arith.maximumf %17, %18 : vector<2x3x16xf32>
    %c0_8 = arith.constant 0 : index
    %c0_9 = arith.constant 0 : index
    %20 = vector.load %arg4[%c0_8, %c0_9] : memref<2x3xf32, #tpu.memory_space<vmem>>, vector<2x3xf32>
    %cst_10 = arith.constant dense<0.000000e+00> : vector<2x3xf32>
    %21 = vector.multi_reduction <add>, %13, %cst_10 [2] : vector<2x3x16xf32> to vector<2x3xf32>
    %22 = arith.addf %20, %21 : vector<2x3xf32>
    %c0_11 = arith.constant 0 : index
    %c0_12 = arith.constant 0 : index
    %23 = vector.load %arg4[%c0_11, %c0_12] : memref<2x3xf32, #tpu.memory_space<vmem>>, vector<2x3xf32>
    tpu.vector_store %arg4[%c0_11, %c0_12], %22 {strides = array<i32>} : memref<2x3xf32, #tpu.memory_space<vmem>>, vector<2x3xf32>,
    %c0_13 = arith.constant 0 : index
    %c0_14 = arith.constant 0 : index
    %24 = vector.load %arg5[%c0_13, %c0_14] : memref<2x3xf32, #tpu.memory_space<vmem>>, vector<2x3xf32>
    %25 = arith.addf %16, %19 : vector<2x3x16xf32>
    %cst_15 = arith.constant dense<0.000000e+00> : vector<2x3xf32>
    %26 = vector.multi_reduction <add>, %25, %cst_15 [2] : vector<2x3x16xf32> to vector<2x3xf32>
    %27 = arith.addf %24, %26 : vector<2x3xf32>
    %c0_16 = arith.constant 0 : index
    %c0_17 = arith.constant 0 : index
    %28 = vector.load %arg5[%c0_16, %c0_17] : memref<2x3xf32, #tpu.memory_space<vmem>>, vector<2x3xf32>
    tpu.vector_store %arg5[%c0_16, %c0_17], %27 {strides = array<i32>} : memref<2x3xf32, #tpu.memory_space<vmem>>, vector<2x3xf32>,
    return
  }
  func.func @transform_0(%arg0: i32, %arg1: i32) -> (i32, i32, i32) {
    %c0_i32 = arith.constant 0 : i32
    %c0_i32_0 = arith.constant 0 : i32
    return %arg0, %c0_i32, %arg1 : i32, i32, i32
  }
  func.func @transform_1(%arg0: i32, %arg1: i32) -> (i32, i32, i32) {
    %c0_i32 = arith.constant 0 : i32
    %c0_i32_0 = arith.constant 0 : i32
    return %arg0, %c0_i32, %arg1 : i32, i32, i32
  }
  func.func @transform_2(%arg0: i32, %arg1: i32) -> (i32, i32) {
    %c0_i32 = arith.constant 0 : i32
    %c0_i32_0 = arith.constant 0 : i32
    return %arg0, %c0_i32 : i32, i32
  }
  func.func @transform_3(%arg0: i32, %arg1: i32) -> (i32, i32) {
    %c0_i32 = arith.constant 0 : i32
    %c0_i32_0 = arith.constant 0 : i32
    return %arg0, %c0_i32 : i32, i32
  }
}

</mosaic_0001>

<bundles_post_ra>
// kernel: index_diceloss.1
= control target key start
LH: loop header
LB: loop body
LE: loop exit
PB: predicated region body
PF: predicated region fallthrough
CT: control target
= control target key end

     0   :  { %9 = vsyncpa [#allocation3], 0  ;;  %s248_s0 = inlined_call_operand.hbm [shape: f32[2,4,16], index: 0, kind: input, shape index: {}]   ;;  %s249_s1 = inlined_call_operand.hbm [shape: f32[2,4,16], index: 1, kind: input, shape index: {}]   ;;  %s250_s2 = inlined_call_operand.vmem [shape: f32[2,3], index: 2, kind: output, shape index: {0}]   ;;  %s251_s3 = inlined_call_operand.vmem [shape: f32[2,3], index: 3, kind: output, shape index: {1}]  }
   0x1   :  { %s15_s14 = sshll.u32 %s248_s0, 4  ;;  %s16_s14 = int_to_ptr.hbm [resolvable:$true] %s15_s14 }
   0x2   :  { %10 = vsyncpa [#allocation5], 0  ;;  %s195_s15 = smov [#allocation2]   ;;  %s28_s19 = sshll.u32 %s249_s1, 4  ;;  %s29_s19 = int_to_ptr.hbm [resolvable:$true] %s28_s19 }
   0x3   :  { %s17_s16 = sshll.u32 %s195_s15, 4  ;;  %s196_s20 = smov 64   ;;  %s18_s16 = int_to_ptr.vmem [resolvable:$true] %s17_s16 }
   0x4   :  { %s197_s21 = smov 4   ;;  %s198_s22 = smov [#allocation4]  }
   0x5   :  { %23 = dma.hbm_to_vmem [thread:$0]  %s16_s14, 128, %s18_s16, [#allocation3], %s196_s20, %s196_s20, %s197_s21  }
   0x6   :  { %s30_s23 = sshll.u32 %s198_s22, 4  ;;  %s31_s23 = int_to_ptr.vmem [resolvable:$true] %s30_s23 }
   0x7   :  { %36 = dma.hbm_to_vmem [thread:$0]  %s29_s19, 128, %s31_s23, [#allocation5], %s196_s20, %s196_s20, %s197_s21  }
   0x8   :  { %191 = dma.done.wait [#allocation3], 128  }
   0x9   :  { %192 = vsyncadd [#allocation3], 4294967168 }
   0xa   :  { %193 = dma.done.wait [#allocation5], 128  }
   0xb   :  { %194 = vsyncadd [#allocation5], 4294967168  ;;  %v52_v0 = vld [vmem:[#allocation2] sm:$0xf]  ;;  %v54_v1 = vld [vmem:[#allocation4] sm:$0xf]  ;;  %v100_v33 = vlaneseq }
   0xc   :  { %v53_v2 = vld [vmem:[#allocation2 + $0x4] sm:$0xf]  ;;  %v72_v3 = vrot.slane %v52_v0, 7  ;;  %v82_v4 = vrot.slane %v54_v1, 7  ;;  %v56_v5 = vmax.f32 %v52_v0, %v54_v1  ;;  %v58_v6 = vmin.f32 %v52_v0, %v54_v1  ;;  %v55_v7 = vld [vmem:[#allocation4 + $0x4] sm:$0xf] }
   0xd   :  { %v73_v8 = vrot.slane %v53_v2, 7  ;;  %v83_v9 = vrot.slane %v55_v7, 7  ;;  %v57_v10 = vmax.f32 %v53_v2, %v55_v7  ;;  %v59_v14 = vmin.f32 %v53_v2, %v55_v7 }
   0xe   :  { %v76_v11 = vsub.f32 %v52_v0, %v72_v3  ;;  %v86_v12 = vsub.f32 %v54_v1, %v82_v4  ;;  %v62_v13 = vrot.slane %v56_v5, 7  ;;  %vm91_vm0 = vcmask 125953  }
   0xf   :  { %v77_v15 = vsub.f32 %v53_v2, %v73_v8  ;;  %v87_v16 = vsub.f32 %v55_v7, %v83_v9  ;;  %v63_v17 = vrot.slane %v57_v10, 7  ;;  %vm49_vm1 = vcmask 17408  }
  0x10   :  { %v78_v18 = vmax.f32 %v76_v11, 0.0  ;;  %v88_v19 = vmax.f32 %v86_v12, 0.0  ;;  %v66_v20 = vsub.f32 %v58_v6, %v62_v13  ;;  %v199_v32 = vmov 0.0  }
  0x11   :  { %v79_v21 = vmax.f32 %v77_v15, 0.0  ;;  %v89_v24 = vmax.f32 %v87_v16, 0.0  ;;  %v67_v25 = vsub.f32 %v59_v14, %v63_v17  ;;  %51 = vst.msk [vmem:[%s251_s3] sm:$0x3] %vm49_vm1, %v199_v32  ;;  %v101_v36 = vand.u32 127, %v100_v33 }
  0x12   :  { %v112_v22 = vadd.f32 %v88_v19, %v78_v18  ;;  %v68_v23 = vmax.f32 %v66_v20, 0.0  ;;  %50 = vst.msk [vmem:[%s250_s2] sm:$0x3] %vm49_vm1, %v199_v32  ;;  %vm105_vm2 = vcmask 1041409  }
  0x13   :  { %v113_v28 = vadd.f32 %v89_v24, %v79_v21  ;;  %v69_v29 = vmax.f32 %v67_v25, 0.0  ;;  %v102_v37 = vadd.s32 1, %v101_v36 }
  0x14   :  { %v114_v26 = vsel %vm91_vm0, %v112_v22, 0.0  ;;  %v92_v27 = vsel %vm91_vm0, %v68_v23, 0.0 }
  0x15   :  { %115 = vadd.xlane.f32.xlu1 %v114_v26  ;;  %93 = vadd.xlane.f32.xlu0 %v92_v27  ;;  %v117_v30 = vsel %vm91_vm0, %v113_v28, 0.0  ;;  %v95_v31 = vsel %vm91_vm0, %v69_v29, 0.0 }
  0x18   :  { %v111_v42 = vld [vmem:[%s251_s3] sm:$0x3] }
  0x19   :  { %v90_v44 = vld [vmem:[%s250_s2] sm:$0x3] }
  0x1d   :  { %118 = vadd.xlane.f32.xlu1 %v117_v30  ;;  %96 = vadd.xlane.f32.xlu0 %v95_v31 }
  0x88   :  { %v116_v34 = vpop.xlane.xlu1 %115  ;;  %v94_v35 = vpop.xlane.xlu0 %93 }
  0x89   :  { %v122_v40 = vperm.slane %v116_v34, %v102_v37  ;;  %v103_v41 = vperm.slane %v94_v35, %v102_v37 }
  0x90   :  { %v119_v38 = vpop.xlane.xlu1 %118  ;;  %v97_v39 = vpop.xlane.xlu0 %96 }
  0x91   :  { %v123_v43 = vperm.slane %v119_v38, %v102_v37  ;;  %v104_v45 = vperm.slane %v97_v39, %v102_v37 }
  0x93   :  { %v124_v46 = vsel %vm105_vm2, %v123_v43, %v122_v40  ;;  %v106_v47 = vsel %vm105_vm2, %v104_v45, %v103_v41 }
  0x94   :  { %v126_v48 = vadd.f32 %v124_v46, %v111_v42  ;;  %v108_v49 = vadd.f32 %v106_v47, %v90_v44 }
  0x96   :  { %127 = vst.msk [vmem:[%s251_s3] sm:$0x3] %vm49_vm1, %v126_v48 }
  0x97   :  { %110 = vst.msk [vmem:[%s250_s2] sm:$0x3] %vm49_vm1, %v108_v49 }
  0x98   :  { %136 = vsyncpa [#allocation3], 1 }
  0x99   :  { %137 = vsyncpa [#allocation5], 1 }

</bundles_post_ra>
